<compile_context>
chip_gen: v7x
topology: tpu7x:2x2x1
jax: 0.10.0
libtpu: 0.0.40
codegen_flags: <defaults>
</compile_context>

<pallas_src>
import functools

import jax
import jax.numpy as jnp
from jax import lax
from jax.experimental import pallas as pl
from jax.experimental.pallas import tpu as pltpu


def _round_up(x, m):
    return ((x + m - 1) // m) * m


def _choose_tile(n_pad):
    # n_pad is always a multiple of 128; pick the largest tile that divides it.
    for t in (512, 256, 128):
        if n_pad % t == 0:
            return t
    return 128


# ------------------------- Pallas aggregation kernel ------------------------ #
def _agg_kernel(a_ref, z_ref, b_ref, o_ref, acc_ref, *, apply_relu):
    """One (row-tile, K-tile) step of  O = act(A @ Z + b)."""
    k = pl.program_id(1)

    @pl.when(k == 0)
    def _():
        acc_ref[...] = jnp.zeros_like(acc_ref)

    acc_ref[...] += jnp.dot(a_ref[...], z_ref[...],
                            preferred_element_type=jnp.float32)

    @pl.when(k == pl.num_programs(1) - 1)
    def _():
        out = acc_ref[...] + b_ref[...]           # f32 bias add
        if apply_relu:
            out = jnp.maximum(out, 0.0)           # f32 ReLU
        o_ref[...] = out.astype(o_ref.dtype)


def _aggregate(a_pad, z_pad, b_pad, *, apply_relu, compute_dtype):
    """Tiled pallas_call computing act(A_pad @ Z_pad + b_pad), f32 output."""
    n_pad = a_pad.shape[0]
    wp = z_pad.shape[1]
    tm = tk = _choose_tile(n_pad)
    grid = (n_pad // tm, n_pad // tk)

    a_c = a_pad.astype(compute_dtype)
    z_c = z_pad.astype(compute_dtype)

    itemsize = jnp.dtype(compute_dtype).itemsize
    cost = pl.CostEstimate(
        flops=2 * n_pad * n_pad * wp,
        transcendentals=0,
        bytes_accessed=(n_pad * n_pad * itemsize            # A read once
                        + n_pad * wp * itemsize * grid[0]   # Z re-read per row tile
                        + n_pad * wp * 4),                  # output write
    )

    kernel = functools.partial(_agg_kernel, apply_relu=apply_relu)
    return pl.pallas_call(
        kernel,
        out_shape=jax.ShapeDtypeStruct((n_pad, wp), jnp.float32),
        grid_spec=pltpu.PrefetchScalarGridSpec(
            num_scalar_prefetch=0,
            grid=grid,
            in_specs=[
                pl.BlockSpec((tm, tk), lambda i, k: (i, k)),   # A_norm tile
                pl.BlockSpec((tk, wp), lambda i, k: (k, 0)),   # Z tile
                pl.BlockSpec((1, wp), lambda i, k: (0, 0)),    # bias (full)
            ],
            out_specs=pl.BlockSpec((tm, wp), lambda i, k: (i, 0)),
            scratch_shapes=[pltpu.VMEM((tm, wp), jnp.float32)],
        ),
        compiler_params=pltpu.CompilerParams(
            dimension_semantics=("parallel", "arbitrary"),
            vmem_limit_bytes=32 * 1024 * 1024,
        ),
        cost_estimate=cost,
    )(a_c, z_c, b_pad.astype(jnp.float32))


# --------------------------------- wrapper ---------------------------------- #
def gcn_graph_model(x, edge_index, batch, params, num_graphs,
                    compute_dtype=jnp.bfloat16):
    """Forward pass matching GCNGraphModel.forward semantics."""
    n = x.shape[0]
    f32 = jnp.float32
    w1, b1, w2, b2 = params
    hidden_dim = w1.shape[1]
    out_dim = w2.shape[1]

    # --- PyG gcn_norm: add self loops, D^-1/2 (A+I) D^-1/2 (dense) ---
    # NOTE: deg is the row sum of A_hat (in-degree incl. self loop); this matches
    # PyG only for undirected / symmetrized edge_index, and duplicate edges are
    # double-counted exactly like un-coalesced PyG.
    src, dst = edge_index[0], edge_index[1]
    loops = jnp.arange(n, dtype=src.dtype)
    src = jnp.concatenate([src, loops])
    dst = jnp.concatenate([dst, loops])
    a_hat = jnp.zeros((n, n), dtype=f32).at[dst, src].add(1.0)
    deg = a_hat.sum(axis=1)
    dinv = jnp.where(deg > 0, lax.rsqrt(deg), 0.0)
    a_norm = dinv[:, None] * a_hat * dinv[None, :]               # [N, N]
    # TODO(synk): for large sparse graphs, replace dense A_norm with a
    # scalar-prefetched block-sparse layout (PrefetchScalarGridSpec gather).

    # --- pad node count and feature widths to lane-dense multiples of 128 ---
    n_pad = _round_up(max(n, 128), 128)
    h_pad = _round_up(max(hidden_dim, 128), 128)
    o_pad = _round_up(max(out_dim, 128), 128)

    a_p = jnp.zeros((n_pad, n_pad), f32).at[:n, :n].set(a_norm)
    x_p = jnp.zeros((n_pad, x.shape[1]), f32).at[:n, :].set(x.astype(f32))

    w1_p = jnp.zeros((w1.shape[0], h_pad), f32).at[:, :hidden_dim].set(w1)
    b1_p = jnp.zeros((1, h_pad), f32).at[:, :hidden_dim].set(
        jnp.reshape(b1, (1, -1)))
    w2_p = jnp.zeros((h_pad, o_pad), f32).at[:hidden_dim, :out_dim].set(w2)
    b2_p = jnp.zeros((1, o_pad), f32).at[:, :out_dim].set(
        jnp.reshape(b2, (1, -1)))

    # --- tiny feature transforms stay in plain XLA (K=4 / K=H) ---
    z1 = x_p @ w1_p                                              # [N_pad, H_pad]
    h1 = _aggregate(a_p, z1, b1_p, apply_relu=True,
                    compute_dtype=compute_dtype)                 # conv1 + ReLU

    z2 = h1 @ w2_p                                               # [N_pad, O_pad]
    h2 = _aggregate(a_p, z2, b2_p, apply_relu=False,
                    compute_dtype=compute_dtype)                 # conv2

    # --- global_mean_pool: tiny G x N matmul in plain XLA ---
    graph_ids = jnp.arange(num_graphs, dtype=batch.dtype)
    one_hot = (batch[None, :] == graph_ids[:, None]).astype(f32)  # [G, N]
    counts = one_hot.sum(axis=1, keepdims=True)
    pool = one_hot / jnp.maximum(counts, 1.0)
    pool_p = jnp.zeros((num_graphs, n_pad), f32).at[:, :n].set(pool)

    return (pool_p @ h2)[:, :out_dim]                            # [G, O]


# --------------------------------- reference -------------------------------- #
def gcn_graph_model_ref(x, edge_index, batch, params, num_graphs):
    n = x.shape[0]
    f32 = jnp.float32
    src, dst = edge_index[0], edge_index[1]
    loops = jnp.arange(n, dtype=src.dtype)
    src = jnp.concatenate([src, loops])
    dst = jnp.concatenate([dst, loops])
    a_hat = jnp.zeros((n, n), dtype=f32).at[dst, src].add(1.0)
    deg = a_hat.sum(axis=1)
    dinv = jnp.where(deg > 0, lax.rsqrt(deg), 0.0)
    a_norm = dinv[:, None] * a_hat * dinv[None, :]
    w1, b1, w2, b2 = params
    h1 = jnp.maximum(a_norm @ (x @ w1) + b1, 0.0)
    h2 = a_norm @ (h1 @ w2) + b2
    one_hot = (batch[None, :] == jnp.arange(num_graphs)[:, None]).astype(f32)
    pool = one_hot / jnp.maximum(one_hot.sum(axis=1, keepdims=True), 1.0)
    return pool @ h2


# ----------------------------------- main ------------------------------------ #
if __name__ == "__main__":
    key = jax.random.PRNGKey(0)

    # Small synthetic "batched" graph: 2 graphs of 8 nodes each (N=16 total).
    num_graphs = 2
    nodes_per_graph = 8
    n = num_graphs * nodes_per_graph
    input_dim, hidden_dim, output_dim = 4, 32, 8

    k_x, k_w1, k_w2 = jax.random.split(key, 3)
    x = jax.random.normal(k_x, (n, input_dim), dtype=jnp.float32)

    # Ring edges within each graph (undirected -> both directions).
    src_list, dst_list = [], []
    for g in range(num_graphs):
        base = g * nodes_per_graph
        for i in range(nodes_per_graph):
            j = (i + 1) % nodes_per_graph
            src_list += [base + i, base + j]
            dst_list += [base + j, base + i]
    edge_index = jnp.array([src_list, dst_list], dtype=jnp.int32)   # [2, E]
    batch = jnp.repeat(jnp.arange(num_graphs, dtype=jnp.int32), nodes_per_graph)

    # Glorot-ish weights, zero bias like PyG GCNConv.
    def glorot(k, shape):
        fan_in, fan_out = shape
        lim = jnp.sqrt(6.0 / (fan_in + fan_out))
        return jax.random.uniform(k, shape, jnp.float32, -lim, lim)

    w1 = glorot(k_w1, (input_dim, hidden_dim))
    b1 = jnp.zeros((hidden_dim,), dtype=jnp.float32)
    w2 = glorot(k_w2, (hidden_dim, output_dim))
    b2 = jnp.zeros((output_dim,), dtype=jnp.float32)
    params = (w1, b1, w2, b2)

    out = gcn_graph_model(x, edge_index, batch, params, num_graphs,
                          compute_dtype=jnp.bfloat16)
    out = jax.block_until_ready(out)

    ref = gcn_graph_model_ref(x, edge_index, batch, params, num_graphs)
    assert out.shape == (num_graphs, output_dim)
    # bf16 MXU inputs with f32 accumulation: loosened tolerance vs f32 reference.
    assert jnp.allclose(out, ref, atol=5e-2, rtol=5e-2), (
        f"max abs err {jnp.max(jnp.abs(out - ref))}")

    print("KERNEL_OK")
</pallas_src>

<mosaic_0001>
module attributes {stable_mosaic.version = 11 : i64} {
  func.func @_agg_kernel(%arg0: i32, %arg1: i32, %arg2: memref<128x128xbf16, #tpu.memory_space<vmem>>, %arg3: memref<128x128xbf16, #tpu.memory_space<vmem>>, %arg4: memref<1x128xf32, #tpu.memory_space<vmem>>, %arg5: memref<128x128xf32, #tpu.memory_space<vmem>>, %arg6: memref<128x128xf32, #tpu.memory_space<vmem>>) attributes {dimension_semantics = [#tpu.dimension_semantics<parallel>, #tpu.dimension_semantics<arbitrary>], iteration_bounds = array<i64: 1, 1>, scalar_prefetch = 0 : i64, scratch_operands = 1 : i64, tpu.core_type = #tpu.core_type<tc>, window_params = [{transform_indices = @transform_0, window_bounds = array<i64: 128, 128>}, {transform_indices = @transform_1, window_bounds = array<i64: 128, 128>}, {pipeline_mode = #tpu.pipeline_mode<synchronous>, transform_indices = @transform_2, window_bounds = array<i64: 1, 128>}, {transform_indices = @transform_3, window_bounds = array<i64: 128, 128>}]} {
    %c0_i32 = arith.constant 0 : i32
    %0 = arith.cmpi eq, %arg1, %c0_i32 : i32
    %1 = arith.extui %0 : i1 to i32
    %c0_i32_0 = arith.constant 0 : i32
    %2 = arith.cmpi ne, %1, %c0_i32_0 : i32
    scf.if %2 {
      %cst_10 = arith.constant 0.000000e+00 : f32
      %12 = vector.broadcast %cst_10 : f32 to vector<128x128xf32>
      %c0_11 = arith.constant 0 : index
      %c0_12 = arith.constant 0 : index
      %13 = vector.load %arg6[%c0_11, %c0_12] : memref<128x128xf32, #tpu.memory_space<vmem>>, vector<128x128xf32>
      tpu.vector_store %arg6[%c0_11, %c0_12], %12 {strides = array<i32>} : memref<128x128xf32, #tpu.memory_space<vmem>>, vector<128x128xf32>,
    } else {
    }
    %c0 = arith.constant 0 : index
    %c0_1 = arith.constant 0 : index
    %3 = vector.load %arg6[%c0, %c0_1] : memref<128x128xf32, #tpu.memory_space<vmem>>, vector<128x128xf32>
    %c0_2 = arith.constant 0 : index
    %c0_3 = arith.constant 0 : index
    %4 = vector.load %arg2[%c0_2, %c0_3] : memref<128x128xbf16, #tpu.memory_space<vmem>>, vector<128x128xbf16>
    %c0_4 = arith.constant 0 : index
    %c0_5 = arith.constant 0 : index
    %5 = vector.load %arg3[%c0_4, %c0_5] : memref<128x128xbf16, #tpu.memory_space<vmem>>, vector<128x128xbf16>
    %cst = arith.constant dense<0.000000e+00> : vector<128x128xf32>
    %6 = tpu.matmul %4, %5, %cst {dimension_numbers = #tpu.dot_dimension_numbers<[1], [0], [0], [1], [0, 0, 1, 1], [], []>} : vector<128x128xbf16>, vector<128x128xbf16>, vector<128x128xf32> -> vector<128x128xf32>
    %7 = arith.addf %3, %6 : vector<128x128xf32>
    %c0_6 = arith.constant 0 : index
    %c0_7 = arith.constant 0 : index
    %8 = vector.load %arg6[%c0_6, %c0_7] : memref<128x128xf32, #tpu.memory_space<vmem>>, vector<128x128xf32>
    tpu.vector_store %arg6[%c0_6, %c0_7], %7 {strides = array<i32>} : memref<128x128xf32, #tpu.memory_space<vmem>>, vector<128x128xf32>,
    %c0_i32_8 = arith.constant 0 : i32
    %9 = arith.cmpi eq, %arg1, %c0_i32_8 : i32
    %10 = arith.extui %9 : i1 to i32
    %c0_i32_9 = arith.constant 0 : i32
    %11 = arith.cmpi ne, %10, %c0_i32_9 : i32
    scf.if %11 {
      %c0_10 = arith.constant 0 : index
      %c0_11 = arith.constant 0 : index
      %12 = vector.load %arg6[%c0_10, %c0_11] : memref<128x128xf32, #tpu.memory_space<vmem>>, vector<128x128xf32>
      %c0_12 = arith.constant 0 : index
      %c0_13 = arith.constant 0 : index
      %13 = vector.load %arg4[%c0_12, %c0_13] : memref<1x128xf32, #tpu.memory_space<vmem>>, vector<1x128xf32>
      %14 = vector.broadcast %13 : vector<1x128xf32> to vector<128x128xf32>
      %15 = arith.addf %12, %14 : vector<128x128xf32>
      %cst_14 = arith.constant 0.000000e+00 : f32
      %16 = vector.broadcast %cst_14 : f32 to vector<128x128xf32>
      %17 = arith.maximumf %15, %16 : vector<128x128xf32>
      %c0_15 = arith.constant 0 : index
      %c0_16 = arith.constant 0 : index
      %18 = vector.load %arg5[%c0_15, %c0_16] : memref<128x128xf32, #tpu.memory_space<vmem>>, vector<128x128xf32>
      tpu.vector_store %arg5[%c0_15, %c0_16], %17 {strides = array<i32>} : memref<128x128xf32, #tpu.memory_space<vmem>>, vector<128x128xf32>,
    } else {
    }
    return
  }
  func.func @transform_0(%arg0: i32, %arg1: i32) -> (i32, i32) {
    %c0_i32 = arith.constant 0 : i32
    return %arg0, %arg1 : i32, i32
  }
  func.func @transform_1(%arg0: i32, %arg1: i32) -> (i32, i32) {
    %c0_i32 = arith.constant 0 : i32
    %c0_i32_0 = arith.constant 0 : i32
    return %arg1, %c0_i32 : i32, i32
  }
  func.func @transform_2(%arg0: i32, %arg1: i32) -> (i32, i32) {
    %c0_i32 = arith.constant 0 : i32
    %c0_i32_0 = arith.constant 0 : i32
    %c0_i32_1 = arith.constant 0 : i32
    return %c0_i32, %c0_i32_0 : i32, i32
  }
  func.func @transform_3(%arg0: i32, %arg1: i32) -> (i32, i32) {
    %c0_i32 = arith.constant 0 : i32
    %c0_i32_0 = arith.constant 0 : i32
    return %arg0, %c0_i32 : i32, i32
  }
}

</mosaic_0001>

<bundles_post_ra>
// kernel: tpu_custom_call.1
= control target key start
LH: loop header
LB: loop body
LE: loop exit
PB: predicated region body
PF: predicated region fallthrough
CT: control target
= control target key end

     0   :  { %8 = vsyncpa [#allocation4], 0  ;;  %s671_s0 = inlined_call_operand.hbm [shape: bf16[128,128], index: 0, kind: input, shape index: {}]   ;;  %s672_s1 = inlined_call_operand.hbm [shape: bf16[128,128], index: 1, kind: input, shape index: {}]   ;;  %s673_s2 = inlined_call_operand.vmem [shape: f32[1,128], index: 2, kind: input, shape index: {}]   ;;  %s674_s3 = inlined_call_operand.hbm [shape: f32[128,128], index: 3, kind: output, shape index: {}]  }
   0x1   :  { %9 = vsyncpa [#allocation7], 0 }
   0x2   :  { %10 = vsyncpa [#allocation5], 0  ;;  %s605_s12 = smov [#allocation3]   ;;  %s533_s16 = scalar_lea.hbm %s671_s0, 1024 }
   0x3   :  { %s16_s13 = sshll.u32 %s605_s12, 4  ;;  %p534_p0 = scmp.ne.s32.totalorder %s671_s0, %s533_s16  ;;  %s17_s13 = int_to_ptr.vmem [resolvable:$true] %s16_s13 }
   0x4   :  { %p537_p1 = scmp.lt.u32.totalorder %s533_s16, %s671_s0 }
   0x6   :  { %p539_p2 = pnand %p537_p1, %p534_p0 }
   0x8   :  { %542 = shalt.err (!%p539_p2)
}
   0x9   :  { %s543_s21 = scalar_lea.vmem %s17_s13, 1024  ;;  %p548_p4 = scmp.lt.s32.totalorder %s17_s13, %s17_s13 }
   0xa   :  { %p544_p3 = scmp.ne.s32.totalorder %s17_s13, %s543_s21  ;;  %p549_p5 = scmp.lt.s32.totalorder %s543_s21, %s543_s21 }
   0xc   :  { %p550_p6 = por %p549_p5, %p548_p4 }
   0xe   :  { %p551_p7 = pnand %p550_p6, %p544_p3 }
  0x10   :  { %554 = shalt.err (!%p551_p7)
}
  0x11   :  { %s606_s22 = smov 64   ;;  %s607_s23 = smov 4  }
  0x12   :  { %22 = dma.hbm_to_vmem [thread:$0]  %s671_s0, 1024, %s17_s13, [#allocation4], %s606_s22, %s606_s22, %s607_s23  }
  0x13   :  { %s608_s26 = smov [#allocation6]   ;;  %s555_s30 = scalar_lea.hbm %s672_s1, 1024 }
  0x14   :  { %s28_s27 = sshll.u32 %s608_s26, 4  ;;  %p556_p8 = scmp.ne.s32.totalorder %s672_s1, %s555_s30  ;;  %s29_s27 = int_to_ptr.vmem [resolvable:$true] %s28_s27 }
  0x15   :  { %p559_p9 = scmp.lt.u32.totalorder %s555_s30, %s672_s1 }
  0x17   :  { %p561_p10 = pnand %p559_p9, %p556_p8 }
  0x19   :  { %564 = shalt.err (!%p561_p10)
}
  0x1a   :  { %s565_s8 = scalar_lea.vmem %s29_s27, 1024  ;;  %p570_p12 = scmp.lt.s32.totalorder %s29_s27, %s29_s27 }
  0x1b   :  { %p566_p11 = scmp.ne.s32.totalorder %s29_s27, %s565_s8  ;;  %p571_p13 = scmp.lt.s32.totalorder %s565_s8, %s565_s8 }
  0x1d   :  { %p572_p0 = por %p571_p13, %p570_p12 }
  0x1f   :  { %p573_p1 = pnand %p572_p0, %p566_p11 }
  0x21   :  { %576 = shalt.err (!%p573_p1)
}
  0x22   :  { %34 = dma.hbm_to_vmem [thread:$0]  %s672_s1, 1024, %s29_s27, [#allocation7], %s606_s22, %s606_s22, %s607_s23  }
  0x23   :  { %599 = dma.done.wait [#allocation4], 1024  }
  0x24   :  { %600 = vsyncadd [#allocation4], 4294966272 }
  0x25   :  { %601 = dma.done.wait [#allocation7], 1024  }
  0x26   :  { %602 = vsyncadd [#allocation7], 4294966272  ;;  %v517_v0 = vld [vmem:[#allocation6] sm:$0xff]   ;;  %v518_v1 = vld [vmem:[#allocation6 + $0x8] sm:$0xff]  }
  0x27   :  { %462 = vmatprep.subr.bf16.mxu0 %v517_v0  ;;  %494 = vmatprep.subr.bf16.mxu1 %v517_v0  ;;  %v519_v2 = vld [vmem:[#allocation6 + $0x10] sm:$0xff]   ;;  %v520_v3 = vld [vmem:[#allocation6 + $0x18] sm:$0xff]   ;;  %v525_v4 = vld [vmem:[#allocation3] sm:$0xff]  }
  0x28   :  { %463 = vmatpush3.bf16.msra.mxu0 %v517_v0  ;;  %502 = vmatpush3.bf16.msra.mxu1 %v517_v0  ;;  %v526_v5 = vld [vmem:[#allocation3 + $0x20] sm:$0xff]   ;;  %v522_v7 = vld [vmem:[#allocation6 + $0x28] sm:$0xff]   ;;  %v523_v8 = vld [vmem:[#allocation6 + $0x30] sm:$0xff]  }
  0x29   :  { %464 = vmatprep.subr.bf16.mxu0 %v518_v1  ;;  %495 = vmatprep.subr.bf16.mxu1 %v518_v1  ;;  %v521_v6 = vld [vmem:[#allocation6 + $0x20] sm:$0xff]   ;;  %v524_v9 = vld [vmem:[#allocation6 + $0x38] sm:$0xff]   ;;  %v527_v10 = vld [vmem:[#allocation3 + $0x8] sm:$0xff]  }
  0x2a   :  { %478 = vmatprep.mubr.bf16.mxu0 %v525_v4  ;;  %486 = vmatprep.mubr.bf16.mxu1 %v526_v5  ;;  %v528_v11 = vld [vmem:[#allocation3 + $0x28] sm:$0xff]   ;;  %v529_v12 = vld [vmem:[#allocation3 + $0x10] sm:$0xff]   ;;  %v531_v14 = vld [vmem:[#allocation3 + $0x18] sm:$0xff]  }
  0x2b   :  { %v530_v13 = vld [vmem:[#allocation3 + $0x30] sm:$0xff]   ;;  %v532_v15 = vld [vmem:[#allocation3 + $0x38] sm:$0xff]   ;;  %v445_v16 = vld [vmem:[%s673_s2] ss:$0 sm:$0xff]  ;;  %s609_s2 = smov [#allocation8]  }
  0x2c   :  { %465 = vmatpush3.bf16.msra.mxu0 %v518_v1  ;;  %503 = vmatpush3.bf16.msra.mxu1 %v518_v1  ;;  %s416_s11 = sshll.u32 %s609_s2, 4  ;;  %s417_s11 = int_to_ptr.vmem [resolvable:$true] %s416_s11 }
  0x2d   :  { %466 = vmatprep.subr.bf16.mxu0 %v519_v2  ;;  %496 = vmatprep.subr.bf16.mxu1 %v519_v2  ;;  %s577_s12 = scalar_lea.vmem %s417_s11, 2048  ;;  %p582_p3 = scmp.lt.s32.totalorder %s417_s11, %s417_s11 }
  0x2e   :  { %p578_p2 = scmp.ne.s32.totalorder %s417_s11, %s577_s12  ;;  %p583_p4 = scmp.lt.s32.totalorder %s577_s12, %s577_s12 }
  0x30   :  { %467 = vmatpush3.bf16.msra.mxu0 %v519_v2  ;;  %504 = vmatpush3.bf16.msra.mxu1 %v519_v2  ;;  %p584_p5 = por %p583_p4, %p582_p3 }
  0x31   :  { %468 = vmatprep.subr.bf16.mxu0 %v520_v3  ;;  %497 = vmatprep.subr.bf16.mxu1 %v520_v3 }
  0x32   :  { %p585_p6 = pnand %p584_p5, %p578_p2 }
  0x34   :  { %469 = vmatpush3.bf16.msra.mxu0 %v520_v3  ;;  %505 = vmatpush3.bf16.msra.mxu1 %v520_v3 }
  0x35   :  { %470 = vmatprep.subr.bf16.mxu0 %v521_v6  ;;  %498 = vmatprep.subr.bf16.mxu1 %v521_v6 }
  0x38   :  { %471 = vmatpush3.bf16.msra.mxu0 %v521_v6  ;;  %506 = vmatpush3.bf16.msra.mxu1 %v521_v6 }
  0x39   :  { %472 = vmatprep.subr.bf16.mxu0 %v522_v7  ;;  %499 = vmatprep.subr.bf16.mxu1 %v522_v7 }
  0x3c   :  { %473 = vmatpush3.bf16.msra.mxu0 %v522_v7  ;;  %507 = vmatpush3.bf16.msra.mxu1 %v522_v7 }
  0x3d   :  { %474 = vmatprep.subr.bf16.mxu0 %v523_v8  ;;  %500 = vmatprep.subr.bf16.mxu1 %v523_v8 }
  0x40   :  { %475 = vmatpush3.bf16.msra.mxu0 %v523_v8  ;;  %508 = vmatpush3.bf16.msra.mxu1 %v523_v8 }
  0x41   :  { %476 = vmatprep.subr.bf16.mxu0 %v524_v9  ;;  %501 = vmatprep.subr.bf16.mxu1 %v524_v9 }
  0x44   :  { %477 = vmatpush3.bf16.msra.mxu0 %v524_v9  ;;  %509 = vmatpush3.bf16.msra.mxu1 %v524_v9 }
  0x47   :  { %479 = vmatmul.mubr.bf16.vlgmr.msra.gmra.mrb[0].mxu0 %v527_v10  ;;  %487 = vmatmul.mubr.bf16.vlgmr.msra.gmra.mrb[0].mxu1 %v528_v11 }
  0x48   :  { %482 = vmatprep.mubr.bf16.mxu0 %v529_v12  ;;  %490 = vmatprep.mubr.bf16.mxu1 %v530_v13 }
  0x4f   :  { %483 = vmatmul.mubr.bf16.gmra.mrb[4].mxu0 %v531_v14  ;;  %491 = vmatmul.mubr.bf16.gmra.mrb[4].mxu1 %v532_v15 }
 0x11a   :  { %v480_v17 = vpop.f32.mrb[0].mxu0  ;;  %v488_v18 = vpop.f32.mrb[0].mxu1 }
 0x11b   :  { %v365_v19 = vadd.f32 %v480_v17, %v445_v16  ;;  %v373_v20 = vadd.f32 %v488_v18, %v445_v16  ;;  %v242_v21 = vpop.f32.mrb[1].mxu0  ;;  %v274_v22 = vpop.f32.mrb[1].mxu1 }
 0x11c   :  { %v363_v23 = vadd.f32 %v445_v16, %v242_v21  ;;  %v371_v24 = vadd.f32 %v445_v16, %v274_v22  ;;  %v481_v25 = vpop.f32.mrb[2].mxu0  ;;  %v489_v26 = vpop.f32.mrb[2].mxu1 }
 0x11d   :  { %v381_v27 = vmax.f32 %v365_v19, 0.0  ;;  %v389_v28 = vmax.f32 %v373_v20, 0.0  ;;  %v366_v29 = vadd.f32 %v481_v25, %v445_v16  ;;  %v374_v30 = vadd.f32 %v489_v26, %v445_v16  ;;  %v245_v31 = vpop.f32.mrb[3].mxu0  ;;  %v277_v32 = vpop.f32.mrb[3].mxu1 }
 0x11e   :  { %v379_v33 = vmax.f32 %v363_v23, 0.0  ;;  %v387_v34 = vmax.f32 %v371_v24, 0.0  ;;  %v364_v35 = vadd.f32 %v445_v16, %v245_v31  ;;  %v372_v36 = vadd.f32 %v445_v16, %v277_v32 }
 0x11f   :  { %397 = vst [vmem:[#allocation8 + $0x10] sm:$0xff] %v381_v27  ;;  %405 = vst [vmem:[#allocation8 + $0x50] sm:$0xff] %v389_v28  ;;  %v382_v37 = vmax.f32 %v366_v29, 0.0  ;;  %v390_v38 = vmax.f32 %v374_v30, 0.0 }
 0x120   :  { %395 = vst [vmem:[#allocation8] sm:$0xff] %v379_v33  ;;  %403 = vst [vmem:[#allocation8 + $0x40] sm:$0xff] %v387_v34  ;;  %v380_v39 = vmax.f32 %v364_v35, 0.0  ;;  %v388_v40 = vmax.f32 %v372_v36, 0.0 }
 0x121   :  { %398 = vst [vmem:[#allocation8 + $0x18] sm:$0xff] %v382_v37  ;;  %406 = vst [vmem:[#allocation8 + $0x58] sm:$0xff] %v390_v38 }
 0x122   :  { %396 = vst [vmem:[#allocation8 + $0x8] sm:$0xff] %v380_v39  ;;  %404 = vst [vmem:[#allocation8 + $0x48] sm:$0xff] %v388_v40  ;;  %v484_v41 = vpop.f32.mrb[4].mxu0  ;;  %v492_v42 = vpop.f32.mrb[4].mxu1 }
 0x123   :  { %v369_v43 = vadd.f32 %v484_v41, %v445_v16  ;;  %v377_v44 = vadd.f32 %v492_v42, %v445_v16  ;;  %v258_v45 = vpop.f32.mrb[5].mxu0  ;;  %v290_v46 = vpop.f32.mrb[5].mxu1 }
 0x124   :  { %v367_v47 = vadd.f32 %v445_v16, %v258_v45  ;;  %v375_v48 = vadd.f32 %v445_v16, %v290_v46  ;;  %v485_v49 = vpop.f32.mrb[6].mxu0  ;;  %v493_v50 = vpop.f32.mrb[6].mxu1 }
 0x125   :  { %v385_v51 = vmax.f32 %v369_v43, 0.0  ;;  %v393_v52 = vmax.f32 %v377_v44, 0.0  ;;  %v370_v53 = vadd.f32 %v485_v49, %v445_v16  ;;  %v378_v54 = vadd.f32 %v493_v50, %v445_v16  ;;  %v261_v55 = vpop.f32.mrb[7].mxu0  ;;  %v293_v56 = vpop.f32.mrb[7].mxu1 }
 0x126   :  { %v383_v57 = vmax.f32 %v367_v47, 0.0  ;;  %v391_v58 = vmax.f32 %v375_v48, 0.0  ;;  %v368_v59 = vadd.f32 %v445_v16, %v261_v55  ;;  %v376_v60 = vadd.f32 %v445_v16, %v293_v56 }
 0x127   :  { %401 = vst [vmem:[#allocation8 + $0x30] sm:$0xff] %v385_v51  ;;  %409 = vst [vmem:[#allocation8 + $0x70] sm:$0xff] %v393_v52  ;;  %v386_v61 = vmax.f32 %v370_v53, 0.0  ;;  %v394_v62 = vmax.f32 %v378_v54, 0.0 }
 0x128   :  { %399 = vst [vmem:[#allocation8 + $0x20] sm:$0xff] %v383_v57  ;;  %407 = vst [vmem:[#allocation8 + $0x60] sm:$0xff] %v391_v58  ;;  %v384_v63 = vmax.f32 %v368_v59, 0.0  ;;  %v392_v0 = vmax.f32 %v376_v60, 0.0 }
 0x129   :  { %402 = vst [vmem:[#allocation8 + $0x38] sm:$0xff] %v386_v61  ;;  %410 = vst [vmem:[#allocation8 + $0x78] sm:$0xff] %v394_v62 }
 0x12a   :  { %400 = vst [vmem:[#allocation8 + $0x28] sm:$0xff] %v384_v63  ;;  %408 = vst [vmem:[#allocation8 + $0x68] sm:$0xff] %v392_v0 }
 0x12b   :  { %588 = shalt.err (!%p585_p6)
}
 0x12c   :  { %s589_s15 = scalar_lea.hbm %s674_s3, 2048 }
 0x12d   :  { %p590_p7 = scmp.ne.s32.totalorder %s674_s3, %s589_s15  ;;  %p593_p8 = scmp.lt.u32.totalorder %s589_s15, %s674_s3 }
 0x12f   :  { %p595_p9 = pnand %p593_p8, %p590_p7 }
 0x131   :  { %598 = shalt.err (!%p595_p9)
}
 0x132   :  { %s610_s20 = smov 128   ;;  %s611_s21 = smov 8  }
 0x133   :  { %422 = dma.vmem_to_hbm [thread:$0]  %s417_s11, 2048, %s674_s3, [#allocation5], %s610_s20, %s610_s20, %s611_s21  }
 0x134   :  { %603 = dma.done.wait [#allocation5], 2048  }
 0x135   :  { %604 = vsyncadd [#allocation5], 4294965248 }
 0x136   :  { %426 = vsyncpa [#allocation4], 1 }
 0x137   :  { %427 = vsyncpa [#allocation7], 1 }
 0x138   :  { %428 = vsyncpa [#allocation5], 1 }

</bundles_post_ra>
